<compile_context>
chip_gen: v6e
topology: v6e:2x2x1
jax: 0.10.0
libtpu: 0.0.40
codegen_flags: <defaults>
</compile_context>

<pallas_src>
import jax
import jax.numpy as jnp
from jax.experimental import pallas as pl
from jax.experimental.pallas import tpu as pltpu

_LANE = 128
_MAX_BLOCK_BYTES = 4 * 1024 * 1024   # ~4 MiB input block; <=16 MiB live double-buffered


def _sublane_quantum(dtype) -> int:
    """Packed sublane tile height: 8 rows for 4-byte, 16 for 2-byte, 32 for 1-byte."""
    itemsize = jnp.dtype(dtype).itemsize
    return max(8, 32 // max(1, itemsize))


def _copy_cast_kernel(x_ref, o_ref):
    # Lane-dense bulk copy of one (block_rows, 128) slab with fused dtype cast.
    o_ref[...] = x_ref[...].astype(o_ref.dtype)


def height_compression(spatial_features_5d: jax.Array,
                       out_dtype=None,
                       materialize: bool = False) -> jax.Array:
    """(N, C, D, H, W) -> (N, C*D, H, W).

    Default (out_dtype=None, materialize=False): metadata-only reshape, no kernel.
    With out_dtype set (and/or materialize=True): a single lane-dense Pallas
    streaming copy that fuses the dtype cast into the reshape's HBM traffic.
    """
    N, C, D, H, W = spatial_features_5d.shape
    out_shape = (N, C * D, H, W)
    in_dtype = spatial_features_5d.dtype
    out_dtype = in_dtype if out_dtype is None else jnp.dtype(out_dtype)

    # Fast path (per perf review): the view is free — launch no kernel.
    if not materialize and out_dtype == in_dtype:
        return spatial_features_5d.reshape(out_shape)

    total = N * C * D * H * W
    if total == 0 or total % _LANE != 0:
        # TODO(synk): ragged totals fall back to plain XLA reshape(+cast);
        # not worth a masked-lane Pallas path for this memcpy-class op.
        return spatial_features_5d.reshape(out_shape).astype(out_dtype)

    # Present the data as a lane-dense 2-D slab: (rows, 128).
    rows = total // _LANE
    x2d = spatial_features_5d.reshape(rows, _LANE)   # metadata-only reshape

    # Dtype-aware sublane quantum covering both the input and output tiling.
    quantum = max(_sublane_quantum(in_dtype), _sublane_quantum(out_dtype))

    in_itemsize = jnp.dtype(in_dtype).itemsize
    out_itemsize = jnp.dtype(out_dtype).itemsize

    if rows <= max(quantum, _MAX_BLOCK_BYTES // (_LANE * in_itemsize)):
        # Small input: one block covering the whole slab (full-extent block is
        # always a legal block shape, even if rows isn't a quantum multiple).
        block_rows = rows
        grid = (1,)
    else:
        # Fixed ~4 MiB block, rounded down to a whole packed vreg tile.
        target_rows = _MAX_BLOCK_BYTES // (_LANE * in_itemsize)
        block_rows = max(quantum, (target_rows // quantum) * quantum)
        grid = (pl.cdiv(rows, block_rows),)   # Pallas masks the ragged tail

    cost = pl.CostEstimate(
        flops=0,
        transcendentals=0,
        bytes_accessed=total * (in_itemsize + out_itemsize),
    )

    out2d = pl.pallas_call(
        _copy_cast_kernel,
        out_shape=jax.ShapeDtypeStruct((rows, _LANE), out_dtype),
        grid_spec=pltpu.PrefetchScalarGridSpec(
            num_scalar_prefetch=0,
            grid=grid,
            in_specs=[pl.BlockSpec((block_rows, _LANE), lambda i: (i, 0))],
            out_specs=pl.BlockSpec((block_rows, _LANE), lambda i: (i, 0)),
        ),
        compiler_params=pltpu.CompilerParams(
            dimension_semantics=("parallel",),      # megacore-shardable on v7x
            vmem_limit_bytes=32 * 1024 * 1024,
        ),
        cost_estimate=cost,
    )(x2d)

    return out2d.reshape(out_shape)   # metadata-only reshape


def height_compression_forward(batch_dict: dict) -> dict:
    """Mirror of HeightCompression.forward on a dict of JAX arrays.

    Fastest path: pure view/reshape, no kernel launched (per perf review).
    """
    x = batch_dict["encoded_spconv_tensor"]  # dense (N, C, D, H, W)
    batch_dict["spatial_features"] = height_compression(x)
    batch_dict["spatial_features_stride"] = batch_dict[
        "encoded_spconv_tensor_stride"
    ]
    return batch_dict


if __name__ == "__main__":
    key = jax.random.PRNGKey(0)

    # Small shapes consistent with the module: N=2, C=4, D=2, H=W=16
    # => NUM_BEV_FEATURES = C * D = 8
    N, C, D, H, W = 2, 4, 2, 16, 16
    x = jax.random.normal(key, (N, C, D, H, W), dtype=jnp.float32)

    # 1) Module forward: pure metadata-only reshape (no kernel — fastest path).
    batch_dict = {
        "encoded_spconv_tensor": x,   # already densified
        "encoded_spconv_tensor_stride": 8,
    }
    out_dict = height_compression_forward(batch_dict)
    spatial_features = jax.block_until_ready(out_dict["spatial_features"])

    ref = x.reshape(N, C * D, H, W)
    assert spatial_features.shape == (N, C * D, H, W)
    assert spatial_features.dtype == x.dtype
    assert jnp.array_equal(spatial_features, ref)
    assert out_dict["spatial_features_stride"] == 8

    # 2) Fused reshape + bf16 cast path: the only case where the Pallas kernel
    #    runs (the copy does useful work — halves the write bytes vs. f32).
    sf_bf16 = jax.block_until_ready(
        height_compression(x, out_dtype=jnp.bfloat16, materialize=True)
    )
    ref_bf16 = ref.astype(jnp.bfloat16)
    assert sf_bf16.shape == (N, C * D, H, W)
    assert sf_bf16.dtype == jnp.bfloat16
    assert jnp.array_equal(sf_bf16, ref_bf16)

    print("KERNEL_OK")
</pallas_src>

<mosaic_0001>
module attributes {stable_mosaic.version = 11 : i64} {
  func.func @_copy_cast_kernel(%arg0: i32, %arg1: memref<32x128xf32, #tpu.memory_space<vmem>>, %arg2: memref<32x128xbf16, #tpu.memory_space<vmem>>) attributes {dimension_semantics = [#tpu.dimension_semantics<parallel>], iteration_bounds = array<i64: 1>, scalar_prefetch = 0 : i64, scratch_operands = 0 : i64, tpu.core_type = #tpu.core_type<tc>, window_params = [{transform_indices = @transform_0, window_bounds = array<i64: 32, 128>}, {transform_indices = @transform_1, window_bounds = array<i64: 32, 128>}]} {
    %c0 = arith.constant 0 : index
    %c0_0 = arith.constant 0 : index
    %0 = vector.load %arg1[%c0, %c0_0] : memref<32x128xf32, #tpu.memory_space<vmem>>, vector<32x128xf32>
    %1 = arith.truncf %0 : vector<32x128xf32> to vector<32x128xbf16>
    %c0_1 = arith.constant 0 : index
    %c0_2 = arith.constant 0 : index
    %2 = vector.load %arg2[%c0_1, %c0_2] : memref<32x128xbf16, #tpu.memory_space<vmem>>, vector<32x128xbf16>
    tpu.vector_store %arg2[%c0_1, %c0_2], %1 {strides = array<i32>} : memref<32x128xbf16, #tpu.memory_space<vmem>>, vector<32x128xbf16>,
    return
  }
  func.func @transform_0(%arg0: i32) -> (i32, i32) {
    %c0_i32 = arith.constant 0 : i32
    %c0_i32_0 = arith.constant 0 : i32
    return %arg0, %c0_i32 : i32, i32
  }
  func.func @transform_1(%arg0: i32) -> (i32, i32) {
    %c0_i32 = arith.constant 0 : i32
    %c0_i32_0 = arith.constant 0 : i32
    return %arg0, %c0_i32 : i32, i32
  }
}

</mosaic_0001>

<bundles_post_ra>
// kernel: tpu_custom_call.1
= control target key start
LH: loop header
LB: loop body
LE: loop exit
PB: predicated region body
PF: predicated region fallthrough
CT: control target
= control target key end

     0   :  { %6 = vsyncpa [#allocation3], 0  ;;  %s155_s0 = inlined_call_operand.hbm [shape: f32[32,128], index: 0, kind: input, shape index: {}]   ;;  %s156_s1 = inlined_call_operand.hbm [shape: bf16[32,128], index: 1, kind: output, shape index: {}]  }
   0x1   :  { %7 = vsyncpa [#allocation4], 0  ;;  %s133_s6 = smov [#allocation2]  }
   0x2   :  { %s13_s7 = sshll.u32 %s133_s6, 4  ;;  %s14_s7 = int_to_ptr.vmem [resolvable:$true] %s13_s7 }
   0x3   :  { %s97_s8 = scalar_lea.vmem %s14_s7, 512  ;;  %p102_p1 = scmp.lt.s32.totalorder %s14_s7, %s14_s7 }
   0x4   :  { %p98_p0 = scmp.ne.s32.totalorder %s14_s7, %s97_s8  ;;  %p103_p2 = scmp.lt.s32.totalorder %s97_s8, %s97_s8 }
   0x6   :  { %p104_p3 = por %p103_p2, %p102_p1 }
   0x8   :  { %p105_p4 = pnand %p104_p3, %p98_p0 }
   0xa   :  { %108 = shalt.err (!%p105_p4)
}
   0xb   :  { %s134_s9 = smov 128   ;;  %s135_s10 = smov 8  }
   0xc   :  { %19 = dma.hbm_to_vmem [thread:$0]  %s155_s0, 512, %s14_s7, [#allocation3], %s134_s9, %s134_s9, %s135_s10  }
   0xd   :  { %129 = dma.done.wait [#allocation3], 512  }
   0xe   :  { %130 = vsyncadd [#allocation3], 4294966784  ;;  %s136_s13 = smov [#allocation5]   ;;  %v23_v0 = vld [vmem:[#allocation2] sm:$0xff]  ;;  %v24_v1 = vld [vmem:[#allocation2 + $0x8] sm:$0xff] }
   0xf   :  { %s52_s14 = sshll.u32 %s136_s13, 4  ;;  %v25_v2 = vld [vmem:[#allocation2 + $0x10] sm:$0xff]  ;;  %v75_v3 = vpack.c.bf16 %v24_v1, %v23_v0  ;;  %v26_v4 = vld [vmem:[#allocation2 + $0x18] sm:$0xff]  ;;  %s53_s14 = int_to_ptr.vmem [resolvable:$true] %s52_s14 }
  0x10   :  { %v80_v5 = vpack.c.bf16 %v26_v4, %v25_v2  ;;  %s109_s15 = scalar_lea.vmem %s53_s14, 256  ;;  %p114_p6 = scmp.lt.s32.totalorder %s53_s14, %s53_s14 }
  0x11   :  { %76 = vst [vmem:[#allocation5] sm:$0xff] %v75_v3   ;;  %p110_p5 = scmp.ne.s32.totalorder %s53_s14, %s109_s15  ;;  %p115_p7 = scmp.lt.s32.totalorder %s109_s15, %s109_s15 }
  0x12   :  { %82 = vst [vmem:[#allocation5 + $0x8] sm:$0xff] %v80_v5  }
  0x13   :  { %p116_p8 = por %p115_p7, %p114_p6 }
  0x15   :  { %p117_p9 = pnand %p116_p8, %p110_p5 }
  0x17   :  { %120 = shalt.err (!%p117_p9)
}
  0x18   :  { %s137_s0 = smov 64   ;;  %s138_s16 = smov 4  }
  0x19   :  { %58 = dma.vmem_to_hbm [thread:$0]  %s53_s14, 256, %s156_s1, [#allocation4], %s137_s0, %s137_s0, %s138_s16  }
  0x1a   :  { %131 = dma.done.wait [#allocation4], 256  }
  0x1b   :  { %132 = vsyncadd [#allocation4], 4294967040 }
  0x1c   :  { %62 = vsyncpa [#allocation3], 1 }
  0x1d   :  { %63 = vsyncpa [#allocation4], 1 }

</bundles_post_ra>
